<compile_context>
chip_gen: v7x
topology: tpu7x:2x2x1
jax: 0.10.0
libtpu: 0.0.40
codegen_flags: <defaults>
</compile_context>

<pallas_src>
import numpy as np
import jax
import jax.numpy as jnp
from jax.experimental import pallas as pl
from jax.experimental.pallas import tpu as pltpu


def _round_up(x: int, m: int) -> int:
    return ((x + m - 1) // m) * m


def edge_encoding_kernel(vals_ref, inv_ref, out_ref):
    """One lane-dense tile of flattened (src, dst) pairs.

    vals_ref : (K, TILE) f32  pre-gathered per-step dot products (0 for invalid steps)
    inv_ref  : (1, TILE) f32  1 / path_len (0 for empty paths)
    out_ref  : (1, TILE) f32
    """
    k_steps = vals_ref.shape[0]
    acc = vals_ref[pl.ds(0, 1), :]
    for step in range(1, k_steps):          # K is small and static -> unrolled VPU adds
        acc = acc + vals_ref[pl.ds(step, 1), :]
    out_ref[...] = acc * inv_ref[...]


def edge_encoding(x, edge_attr, edge_weights, paths, lens, *, lane_tile=4096):
    """Pallas EdgeEncoding forward.

    x            : (N, node_dim) f32  (only N is used, as in the torch module)
    edge_attr    : (E, edge_dim) f32
    edge_weights : (K, edge_dim) f32  (K = max_path_distance)
    paths        : (K, N, N)     i32  edge index per step; invalid steps == E (sentinel)
    lens         : (N, N)        f32  number of valid steps per pair
    returns cij  : (N, N)        f32
    """
    n = x.shape[0]
    e = edge_attr.shape[0]
    k = edge_weights.shape[0]

    # Hoisted, data-compressing contraction (f32-exact per the correctness review).
    dt = jnp.dot(edge_weights.astype(jnp.float32),
                 edge_attr.astype(jnp.float32).T,
                 precision=jax.lax.Precision.HIGHEST)             # (K, E)
    dt = jnp.pad(dt, ((0, 0), (0, 1)))                            # sentinel column E -> 0

    # Flatten the (src, dst) pair axis; pre-gather per-step values in XLA.
    p = n * n
    paths_flat = jnp.clip(paths.astype(jnp.int32).reshape(k, p), 0, e)
    vals = jnp.take_along_axis(dt, paths_flat, axis=1)            # (K, P) f32
    lens_flat = lens.astype(jnp.float32).reshape(1, p)
    inv_len = jnp.where(lens_flat > 0.0, 1.0 / jnp.maximum(lens_flat, 1.0), 0.0)

    # Lane-dense tiling of the pair axis (128-lane multiples).
    p_aligned = _round_up(p, 128)
    lane_tile = max(128, min(lane_tile, p_aligned))
    if p_aligned // lane_tile < 2 and p_aligned >= 256:
        # Guarantee >= 2 grid steps so both v7x TensorCores get work ("parallel" axis).
        lane_tile = _round_up(p_aligned // 2, 128)
    p_pad = _round_up(p, lane_tile)

    vals = jnp.pad(vals, ((0, 0), (0, p_pad - p)))
    inv_len = jnp.pad(inv_len, ((0, 0), (0, p_pad - p)))

    grid = (p_pad // lane_tile,)
    out = pl.pallas_call(
        edge_encoding_kernel,
        out_shape=jax.ShapeDtypeStruct((1, p_pad), jnp.float32),
        grid=grid,
        in_specs=[
            pl.BlockSpec((k, lane_tile), lambda i: (0, i)),       # streamed value tiles
            pl.BlockSpec((1, lane_tile), lambda i: (0, i)),       # streamed 1/len tiles
        ],
        out_specs=pl.BlockSpec((1, lane_tile), lambda i: (0, i)),
        compiler_params=pltpu.CompilerParams(
            dimension_semantics=("parallel",),
            vmem_limit_bytes=32 * 1024 * 1024,   # tiny tiles; fits v5e/v6e/v7x defaults
        ),
    )(vals, inv_len)

    return out[0, :p].reshape(n, n)


def paths_dict_to_arrays(edge_paths, n_nodes, max_path_distance, num_edges):
    """Host-side glue: dict-of-dicts of edge-index lists -> padded dense arrays.

    Returns
      paths : (K, N, N) int32, invalid / padded steps set to `num_edges` (sentinel)
      lens  : (N, N)    float32, number of valid steps per pair
    """
    paths = np.full((max_path_distance, n_nodes, n_nodes), num_edges, dtype=np.int32)
    lens = np.zeros((n_nodes, n_nodes), dtype=np.float32)
    for src in edge_paths:
        for dst in edge_paths[src]:
            path = list(edge_paths[src][dst])[:max_path_distance]
            lens[src, dst] = float(len(path))
            for step, e_idx in enumerate(path):
                if not (0 <= int(e_idx) < num_edges):
                    raise ValueError(f"edge index {e_idx} out of range [0, {num_edges})")
                paths[step, src, dst] = int(e_idx)
    return jnp.asarray(paths), jnp.asarray(lens)


def edge_encoding_reference(x, edge_attr, edge_weights, edge_paths, max_path_distance):
    """Pure numpy re-implementation of the torch forward, for verification."""
    n = x.shape[0]
    ew = np.asarray(edge_weights)
    ea = np.asarray(edge_attr)
    cij = np.zeros((n, n), dtype=np.float32)
    for src in edge_paths:
        for dst in edge_paths[src]:
            p = list(edge_paths[src][dst])[:max_path_distance]
            if len(p) == 0:
                cij[src, dst] = 0.0  # nan_to_num of the empty mean
                continue
            prod = ew[: len(p)] * ea[np.asarray(p)]
            cij[src, dst] = prod.sum(axis=1).mean()
    return np.nan_to_num(cij)


if __name__ == "__main__":
    # Small deterministic problem.
    N = 8                  # number of nodes
    NODE_DIM = 16          # node feature dim (only shape[0] is used)
    E = 12                 # number of edges
    EDGE_DIM = 16          # edge feature dim
    MAX_PATH_DISTANCE = 4

    key = jax.random.PRNGKey(0)
    kx, ka, kw = jax.random.split(key, 3)
    x = jax.random.normal(kx, (N, NODE_DIM), dtype=jnp.float32)
    edge_attr = jax.random.normal(ka, (E, EDGE_DIM), dtype=jnp.float32)
    # Parameter init: torch.randn(max_path_distance, edge_dim)
    edge_weights = jax.random.normal(kw, (MAX_PATH_DISTANCE, EDGE_DIM), dtype=jnp.float32)

    # Synthetic edge_paths: dict[src][dst] -> list of edge indices.
    edge_paths = {
        0: {1: [0], 2: [0, 3], 5: []},                 # includes an empty path
        1: {3: [2, 4, 5, 7, 9], 0: [1]},               # path longer than K (truncated)
        2: {4: [3, 6], 6: [3, 6, 8]},
        3: {7: [5, 10, 11]},
        5: {2: [7], 6: [7, 2, 1, 0]},
        7: {0: [11, 10, 9, 8]},
    }

    paths, lens = paths_dict_to_arrays(edge_paths, N, MAX_PATH_DISTANCE, E)

    cij = edge_encoding(x, edge_attr, edge_weights, paths, lens)
    cij = jax.block_until_ready(cij)

    ref = edge_encoding_reference(x, edge_attr, edge_weights, edge_paths, MAX_PATH_DISTANCE)
    np.testing.assert_allclose(np.asarray(cij), ref, rtol=1e-4, atol=1e-4)

    print("KERNEL_OK")
</pallas_src>

<mosaic_0001>
module attributes {stable_mosaic.version = 11 : i64} {
  func.func @edge_encoding_kernel(%arg0: i32, %arg1: memref<4x128xf32, #tpu.memory_space<vmem>>, %arg2: memref<1x128xf32, #tpu.memory_space<vmem>>, %arg3: memref<1x128xf32, #tpu.memory_space<vmem>>) attributes {dimension_semantics = [#tpu.dimension_semantics<parallel>], iteration_bounds = array<i64: 1>, scalar_prefetch = 0 : i64, scratch_operands = 0 : i64, tpu.core_type = #tpu.core_type<tc>, window_params = [{transform_indices = @transform_0, window_bounds = array<i64: 4, 128>}, {transform_indices = @transform_1, window_bounds = array<i64: 1, 128>}, {transform_indices = @transform_2, window_bounds = array<i64: 1, 128>}]} {
    %c0 = arith.constant 0 : index
    %c0_0 = arith.constant 0 : index
    %0 = vector.load %arg1[%c0, %c0_0] : memref<4x128xf32, #tpu.memory_space<vmem>>, vector<1x128xf32>
    %c1 = arith.constant 1 : index
    %c0_1 = arith.constant 0 : index
    %1 = vector.load %arg1[%c1, %c0_1] : memref<4x128xf32, #tpu.memory_space<vmem>>, vector<1x128xf32>
    %2 = arith.addf %0, %1 : vector<1x128xf32>
    %c2 = arith.constant 2 : index
    %c0_2 = arith.constant 0 : index
    %3 = vector.load %arg1[%c2, %c0_2] : memref<4x128xf32, #tpu.memory_space<vmem>>, vector<1x128xf32>
    %4 = arith.addf %2, %3 : vector<1x128xf32>
    %c3 = arith.constant 3 : index
    %c0_3 = arith.constant 0 : index
    %5 = vector.load %arg1[%c3, %c0_3] : memref<4x128xf32, #tpu.memory_space<vmem>>, vector<1x128xf32>
    %6 = arith.addf %4, %5 : vector<1x128xf32>
    %c0_4 = arith.constant 0 : index
    %c0_5 = arith.constant 0 : index
    %7 = vector.load %arg2[%c0_4, %c0_5] : memref<1x128xf32, #tpu.memory_space<vmem>>, vector<1x128xf32>
    %8 = arith.mulf %6, %7 : vector<1x128xf32>
    %c0_6 = arith.constant 0 : index
    %c0_7 = arith.constant 0 : index
    %9 = vector.load %arg3[%c0_6, %c0_7] : memref<1x128xf32, #tpu.memory_space<vmem>>, vector<1x128xf32>
    tpu.vector_store %arg3[%c0_6, %c0_7], %8 {strides = array<i32>} : memref<1x128xf32, #tpu.memory_space<vmem>>, vector<1x128xf32>,
    return
  }
  func.func @transform_0(%arg0: i32) -> (i32, i32) {
    %c0_i32 = arith.constant 0 : i32
    %c0_i32_0 = arith.constant 0 : i32
    return %c0_i32, %arg0 : i32, i32
  }
  func.func @transform_1(%arg0: i32) -> (i32, i32) {
    %c0_i32 = arith.constant 0 : i32
    %c0_i32_0 = arith.constant 0 : i32
    return %c0_i32, %arg0 : i32, i32
  }
  func.func @transform_2(%arg0: i32) -> (i32, i32) {
    %c0_i32 = arith.constant 0 : i32
    %c0_i32_0 = arith.constant 0 : i32
    return %c0_i32, %arg0 : i32, i32
  }
}

</mosaic_0001>

<bundles_post_ra>
// kernel: tpu_custom_call.1
= control target key start
LH: loop header
LB: loop body
LE: loop exit
PB: predicated region body
PF: predicated region fallthrough
CT: control target
= control target key end

     0   :  { %7 = vsyncpa [#allocation3], 0  ;;  %s143_s0 = inlined_call_operand.hbm [shape: f32[4,128], index: 0, kind: input, shape index: {}]   ;;  %s144_s1 = inlined_call_operand.vmem [shape: f32[1,128], index: 1, kind: input, shape index: {}]   ;;  %s145_s2 = inlined_call_operand.hbm [shape: f32[1,128], index: 2, kind: output, shape index: {}]  }
   0x1   :  { %8 = vsyncpa [#allocation4], 0  ;;  %s99_s9 = smov [#allocation2]   ;;  %s51_s13 = scalar_lea.hbm %s143_s0, 64 }
   0x2   :  { %s15_s10 = sshll.u32 %s99_s9, 4  ;;  %p52_p0 = scmp.ne.s32.totalorder %s143_s0, %s51_s13  ;;  %s16_s10 = int_to_ptr.vmem [resolvable:$true] %s15_s10 }
   0x3   :  { %p55_p1 = scmp.lt.u32.totalorder %s51_s13, %s143_s0 }
   0x5   :  { %p57_p2 = pnand %p55_p1, %p52_p0 }
   0x7   :  { %60 = shalt.err (!%p57_p2)
}
   0x8   :  { %s61_s18 = scalar_lea.vmem %s16_s10, 64  ;;  %p66_p4 = scmp.lt.s32.totalorder %s16_s10, %s16_s10 }
   0x9   :  { %p62_p3 = scmp.ne.s32.totalorder %s16_s10, %s61_s18  ;;  %p67_p5 = scmp.lt.s32.totalorder %s61_s18, %s61_s18 }
   0xb   :  { %p68_p6 = por %p67_p5, %p66_p4 }
   0xd   :  { %p69_p7 = pnand %p68_p6, %p62_p3 }
   0xf   :  { %72 = shalt.err (!%p69_p7)
}
  0x10   :  { %18 = dma.hbm_to_vmem [thread:$0]  %s143_s0, 64, %s16_s10, [#allocation3]  }
  0x11   :  { %95 = dma.done.wait [#allocation3], 64  }
  0x12   :  { %96 = vsyncadd [#allocation3], 4294967232  ;;  %v24_v0 = vld [vmem:[#allocation2] sm:$0x1]  ;;  %v25_v1 = vld [vmem:[#allocation2 + $0x1] sm:$0x1] }
  0x13   :  { %v27_v2 = vld [vmem:[#allocation2 + $0x2] sm:$0x1]  ;;  %v26_v3 = vadd.f32 %v25_v1, %v24_v0  ;;  %v29_v4 = vld [vmem:[#allocation2 + $0x3] sm:$0x1]  ;;  %v31_v6 = vld [vmem:[%s144_s1] sm:$0x1] }
  0x14   :  { %s100_s23 = smov [#allocation5]  }
  0x15   :  { %v28_v5 = vadd.f32 %v27_v2, %v26_v3  ;;  %s40_s24 = sshll.u32 %s100_s23, 4  ;;  %s41_s24 = int_to_ptr.vmem [resolvable:$true] %s40_s24 }
  0x16   :  { %s73_s25 = scalar_lea.vmem %s41_s24, 16  ;;  %s77_s0 = scalar_lea.vmem %s41_s24, 32 }
  0x17   :  { %v30_v7 = vadd.f32 %v29_v4, %v28_v5  ;;  %p74_p8 = scmp.ne.s32.totalorder %s41_s24, %s73_s25  ;;  %p78_p9 = scmp.lt.s32.totalorder %s41_s24, %s41_s24 }
  0x18   :  { %p79_p10 = scmp.lt.s32.totalorder %s77_s0, %s73_s25 }
  0x19   :  { %v32_v8 = vmul.f32 %v31_v6, %v30_v7 }
  0x1a   :  { %p80_p11 = por %p79_p10, %p78_p9 }
  0x1b   :  { %33 = vst [vmem:[#allocation5] sm:$0x1] %v32_v8 }
  0x1c   :  { %p81_p12 = pnand %p80_p11, %p74_p8 }
  0x1e   :  { %84 = shalt.err (!%p81_p12)
}
  0x1f   :  { %s85_s28 = scalar_lea.hbm %s145_s2, 16 }
  0x20   :  { %p86_p13 = scmp.ne.s32.totalorder %s145_s2, %s85_s28  ;;  %p89_p0 = scmp.lt.u32.totalorder %s85_s28, %s145_s2 }
  0x22   :  { %p91_p1 = pnand %p89_p0, %p86_p13 }
  0x24   :  { %94 = shalt.err (!%p91_p1)
}
  0x25   :  { %43 = dma.vmem_to_hbm [thread:$0]  %s41_s24, 16, %s145_s2, [#allocation4]  }
  0x26   :  { %97 = dma.done.wait [#allocation4], 16  }
  0x27   :  { %98 = vsyncadd [#allocation4], 4294967280 }
  0x28   :  { %47 = vsyncpa [#allocation3], 1 }
  0x29   :  { %48 = vsyncpa [#allocation4], 1 }

</bundles_post_ra>
